<compile_context>
chip_gen: v5e
topology: v5e:2x2
jax: 0.10.0
libtpu: 0.0.40
codegen_flags: <defaults>
</compile_context>

<pallas_src>
import math

import jax
import jax.numpy as jnp
from jax.experimental import pallas as pl
from jax.experimental.pallas import tpu as pltpu

_LANES = 128
_SUBLANES = 8
_TILE_ROWS = 4096             # 4096 x 128 x 4B = 2 MiB per input per pipeline buffer
_MIN_KERNEL_ELEMENTS = 32768  # below this, a Pallas launch is pure overhead


def _num_parts_for_backend() -> int:
    """2 grid 'parts' on chips with two TensorCores behind one device, else 1."""
    try:
        kind = jax.devices()[0].device_kind.lower()
    except Exception:
        return 1
    # Single-TensorCore-per-device chips: redundant part axis is pure overhead.
    if any(t in kind for t in ("lite", "v5e", "v6e", "v6 lite", "v2", "v3")):
        return 1
    # Megacore-style chips (two TCs behind one device).
    if any(t in kind for t in ("v4", "v5p", "v7", "7x")):
        # TODO(synk): verify on v7x that the "parallel" axis really shards across both
        # TensorCores; if a profile shows serial execution, switch the first grid axis
        # to pltpu.CORE_PARALLEL.
        return 2
    return 1


def _asym_loss_kernel(params_ref, nrows_ref, pred_ref, targ_ref, out_ref):
    """One (TILE_ROWS, 128) tile of the asymmetric-MSE partial sum.

    params_ref : SMEM f32[2]  = [threshold, penalty_factor]
    nrows_ref  : SMEM i32[1]  = [valid row count of the (rows, 128) slab]
    pred_ref   : VMEM f32[tile_rows, 128]
    targ_ref   : VMEM f32[tile_rows, 128]
    out_ref    : VMEM f32[1, 8, 128] per-part partial-sum accumulator.
    """
    part = pl.program_id(0)
    j = pl.program_id(1)
    blocks_per_part = pl.num_programs(1)

    @pl.when(j == 0)
    def _init():
        out_ref[...] = jnp.zeros_like(out_ref)

    threshold = params_ref[0]
    penalty_factor = params_ref[1]
    rows_valid = nrows_ref[0]

    preds = pred_ref[...]
    targs = targ_ref[...]

    diff = preds - targs
    base_loss = diff * diff                                   # MSE, reduction='none'
    # incorrect 'Play': predicted >= threshold but actual < threshold
    incorrect_play = jnp.logical_and(preds >= threshold, targs < threshold)
    weighted = base_loss * jnp.where(incorrect_play, penalty_factor, jnp.float32(1.0))

    tile_rows, lanes = preds.shape
    logical_block = part * blocks_per_part + j
    row0 = logical_block * tile_rows
    # Tile lies fully inside the valid rows -> no masking needed (hot path).
    full_tile = (row0 + tile_rows) <= rows_valid

    @pl.when(full_tile)
    def _fast():
        acc = jnp.sum(weighted.reshape(tile_rows // _SUBLANES, _SUBLANES, lanes), axis=0)
        out_ref[...] = out_ref[...] + acc[None, :, :]

    @pl.when(jnp.logical_not(full_tile))
    def _masked():
        # Final partial block (Pallas-padded, undefined rows beyond rows_valid) or a
        # clamped overflow block of the last part (fully masked).  Keep the select
        # (not multiply-by-mask): padded garbage may be NaN/Inf.
        row_idx = row0 + jax.lax.broadcasted_iota(jnp.int32, weighted.shape, 0)
        contrib = jnp.where(row_idx < rows_valid, weighted, jnp.float32(0.0))
        acc = jnp.sum(contrib.reshape(tile_rows // _SUBLANES, _SUBLANES, lanes), axis=0)
        out_ref[...] = out_ref[...] + acc[None, :, :]


def _reference_loss(predictions, targets, threshold=1.5, penalty_factor=5.0):
    """Pure-JAX reference (mirrors the PyTorch forward exactly)."""
    predictions = jnp.asarray(predictions, jnp.float32)
    targets = jnp.asarray(targets, jnp.float32)
    if targets.ndim == 1:
        targets = targets[:, None]
    base_loss = (predictions - targets) ** 2
    cond = (predictions >= threshold) & (targets < threshold)
    penalty = jnp.where(cond, jnp.float32(penalty_factor), jnp.float32(1.0))
    return jnp.mean(base_loss * penalty)


def asymmetric_advice_loss(predictions, targets, threshold=1.5, penalty_factor=5.0,
                           min_kernel_elements=_MIN_KERNEL_ELEMENTS):
    """JAX/Pallas equivalent of AsymmetricAdviceLoss.forward."""
    predictions = jnp.asarray(predictions, dtype=jnp.float32)
    targets = jnp.asarray(targets, dtype=jnp.float32)

    # targets.unsqueeze(1) if 1-D (matches the PyTorch module), then broadcast.
    if targets.ndim == 1:
        targets = targets[:, None]
    shape = jnp.broadcast_shapes(predictions.shape, targets.shape)
    # Only materialize a broadcast when shapes actually differ.
    # TODO(synk): for wide heads ((batch, K>1) preds vs (batch, 1) targets), broadcast
    # targets inside the kernel (stride-0 rows) instead of materializing K copies.
    if predictions.shape != shape:
        predictions = jnp.broadcast_to(predictions, shape)
    if targets.shape != shape:
        targets = jnp.broadcast_to(targets, shape)

    n = math.prod(shape) if shape else 1
    rows = n // _LANES

    if n < min_kernel_elements or rows < _SUBLANES:
        # Kernel launch + DMA overhead dominates at tiny sizes.
        return _reference_loss(predictions, targets, threshold, penalty_factor)
    if rows >= 2 ** 31:
        raise ValueError("asymmetric_advice_loss: input too large for int32 row indexing")

    pred_flat = predictions.reshape(-1)
    targ_flat = targets.reshape(-1)
    full = rows * _LANES
    tail = n - full

    # 128-aligned prefix -> lane-dense (rows, 128) slab.  No jnp.pad full copy:
    # aligned case is a free reshape; ragged case is a prefix slice plus a tiny
    # pure-JAX sum over the <=127-element tail.
    if tail:
        pred_slab = pred_flat[:full].reshape(rows, _LANES)
        targ_slab = targ_flat[:full].reshape(rows, _LANES)
        tp = pred_flat[full:]
        tt = targ_flat[full:]
        d = tp - tt
        w = jnp.where((tp >= threshold) & (tt < threshold),
                      jnp.float32(penalty_factor), jnp.float32(1.0))
        tail_sum = jnp.sum(d * d * w)
    else:
        pred_slab = pred_flat.reshape(rows, _LANES)
        targ_slab = targ_flat.reshape(rows, _LANES)
        tail_sum = jnp.float32(0.0)

    # tile_rows: multiple of 8, <= rows, <= _TILE_ROWS.
    tile_rows = min(_TILE_ROWS, (rows // _SUBLANES) * _SUBLANES)
    num_blocks = int(pl.cdiv(rows, tile_rows))
    num_parts = min(_num_parts_for_backend(), num_blocks)
    blocks_per_part = int(pl.cdiv(num_blocks, num_parts))

    def _data_map(p, j):
        # Trailing grid steps of the last part may point past the final data block;
        # clamp onto the last block (re-read, fully masked inside the kernel).
        logical = p * blocks_per_part + j
        return (jnp.minimum(logical, num_blocks - 1), 0)

    data_spec = pl.BlockSpec((tile_rows, _LANES), _data_map)
    smem_spec = pl.BlockSpec(memory_space=pltpu.MemorySpace.SMEM)

    tile_bytes = tile_rows * _LANES * 4
    # 2 inputs x double-buffered tiles + accumulator + generous headroom; well inside
    # v7x's 64 MiB physical VMEM and every chip's scoped limits.
    vmem_limit = int(2 * 2 * tile_bytes + (16 << 20))

    params = jnp.array([threshold, penalty_factor], dtype=jnp.float32)
    nrows = jnp.array([rows], dtype=jnp.int32)

    cost = pl.CostEstimate(flops=8 * full, transcendentals=0, bytes_accessed=2 * 4 * full)

    partials = pl.pallas_call(
        _asym_loss_kernel,
        out_shape=jax.ShapeDtypeStruct((num_parts, _SUBLANES, _LANES), jnp.float32),
        grid=(num_parts, blocks_per_part),
        in_specs=[smem_spec, smem_spec, data_spec, data_spec],
        out_specs=pl.BlockSpec((1, _SUBLANES, _LANES), lambda p, j: (p, 0, 0)),
        compiler_params=pltpu.CompilerParams(
            dimension_semantics=("parallel", "arbitrary"),
            vmem_limit_bytes=vmem_limit,
        ),
        cost_estimate=cost,
    )(params, nrows, pred_slab, targ_slab)

    # Each part's (8, 128) block holds genuine partial sums; reduce everything,
    # add the ragged tail, normalize by the true element count.
    return (jnp.sum(partials) + tail_sum) / jnp.float32(n)


if __name__ == "__main__":
    key = jax.random.PRNGKey(0)
    k1, k2, k3, k4, k5, k6, k7, k8 = jax.random.split(key, 8)

    # (a) Typical module usage at tiny size: regression head -> (batch, 1) preds,
    #     (batch,) targets.  Dispatches to the pure-JAX fast path.
    batch_small = 256
    preds_small = jax.random.uniform(k1, (batch_small, 1), jnp.float32, 0.0, 3.0)
    targs_small = jax.random.uniform(k2, (batch_small,), jnp.float32, 0.0, 3.0)
    ref_small = jax.block_until_ready(_reference_loss(preds_small, targs_small))
    loss_small = jax.block_until_ready(asymmetric_advice_loss(preds_small, targs_small))
    assert jnp.allclose(loss_small, ref_small, rtol=1e-5, atol=1e-6), (loss_small, ref_small)

    # (b) Forced kernel on a small ragged input: rows=20 (partial last block) and a
    #     37-element tail handled in the wrapper.
    batch_ragged = 20 * 128 + 37
    preds_rag = jax.random.uniform(k3, (batch_ragged, 1), jnp.float32, 0.0, 3.0)
    targs_rag = jax.random.uniform(k4, (batch_ragged,), jnp.float32, 0.0, 3.0)
    loss_rag = jax.block_until_ready(
        asymmetric_advice_loss(preds_rag, targs_rag, min_kernel_elements=0))
    ref_rag = jax.block_until_ready(_reference_loss(preds_rag, targs_rag))
    assert jnp.allclose(loss_rag, ref_rag, rtol=1e-5, atol=1e-6), (loss_rag, ref_rag)

    # (c) Forced kernel on a 128-aligned input: zero-copy reshape path, single block.
    batch_aligned = 96 * 128
    preds_al = jax.random.uniform(k5, (batch_aligned, 1), jnp.float32, 0.0, 3.0)
    targs_al = jax.random.uniform(k6, (batch_aligned,), jnp.float32, 0.0, 3.0)
    loss_al = jax.block_until_ready(
        asymmetric_advice_loss(preds_al, targs_al, min_kernel_elements=0))
    ref_al = jax.block_until_ready(_reference_loss(preds_al, targs_al))
    assert jnp.allclose(loss_al, ref_al, rtol=1e-5, atol=1e-6), (loss_al, ref_al)

    # (d) Default dispatch, multi-block streaming with 4096-row tiles, partial final
    #     block and a ragged tail: exercises accumulation across the "arbitrary" axis
    #     and (on megacore chips) the 2-part parallel split with a clamped overflow block.
    batch_big = 1_050_000
    preds_big = jax.random.uniform(k7, (batch_big, 1), jnp.float32, 0.0, 3.0)
    targs_big = jax.random.uniform(k8, (batch_big,), jnp.float32, 0.0, 3.0)
    loss_big = jax.block_until_ready(asymmetric_advice_loss(preds_big, targs_big))
    ref_big = jax.block_until_ready(_reference_loss(preds_big, targs_big))
    assert jnp.allclose(loss_big, ref_big, rtol=1e-4, atol=1e-5), (loss_big, ref_big)

    print("KERNEL_OK")
</pallas_src>

<mosaic_0001>
module attributes {stable_mosaic.version = 11 : i64} {
  func.func @_asym_loss_kernel(%arg0: i32, %arg1: i32, %arg2: memref<2xf32, #tpu.memory_space<smem>>, %arg3: memref<1xi32, #tpu.memory_space<smem>>, %arg4: memref<16x128xf32, #tpu.memory_space<vmem>>, %arg5: memref<16x128xf32, #tpu.memory_space<vmem>>, %arg6: memref<1x8x128xf32, #tpu.memory_space<vmem>>) attributes {dimension_semantics = [#tpu.dimension_semantics<parallel>, #tpu.dimension_semantics<arbitrary>], iteration_bounds = array<i64: 1, 2>, scalar_prefetch = 0 : i64, scratch_operands = 0 : i64, tpu.core_type = #tpu.core_type<tc>, window_params = [{transform_indices = @transform_0, window_bounds = array<i64: 2>}, {transform_indices = @transform_1, window_bounds = array<i64: 1>}, {transform_indices = @transform_2, window_bounds = array<i64: 16, 128>}, {transform_indices = @transform_3, window_bounds = array<i64: 16, 128>}, {transform_indices = @transform_4, window_bounds = array<i64: 1, 8, 128>}]} {
    %c0_i32 = arith.constant 0 : i32
    %0 = arith.cmpi eq, %arg1, %c0_i32 : i32
    %1 = arith.extui %0 : i1 to i32
    %c0_i32_0 = arith.constant 0 : i32
    %2 = arith.cmpi ne, %1, %c0_i32_0 : i32
    scf.if %2 {
      %cst_9 = arith.constant 0.000000e+00 : f32
      %29 = vector.broadcast %cst_9 : f32 to vector<1x8x128xf32>
      %c0_10 = arith.constant 0 : index
      %c0_11 = arith.constant 0 : index
      %c0_12 = arith.constant 0 : index
      %30 = vector.load %arg6[%c0_10, %c0_11, %c0_12] : memref<1x8x128xf32, #tpu.memory_space<vmem>>, vector<1x8x128xf32>
      tpu.vector_store %arg6[%c0_10, %c0_11, %c0_12], %29 {strides = array<i32>} : memref<1x8x128xf32, #tpu.memory_space<vmem>>, vector<1x8x128xf32>,
    } else {
    }
    %c0 = arith.constant 0 : index
    %3 = memref.load %arg2[%c0] : memref<2xf32, #tpu.memory_space<smem>>
    %c1 = arith.constant 1 : index
    %4 = memref.load %arg2[%c1] : memref<2xf32, #tpu.memory_space<smem>>
    %c0_1 = arith.constant 0 : index
    %5 = memref.load %arg3[%c0_1] : memref<1xi32, #tpu.memory_space<smem>>
    %c0_2 = arith.constant 0 : index
    %c0_3 = arith.constant 0 : index
    %6 = vector.load %arg4[%c0_2, %c0_3] : memref<16x128xf32, #tpu.memory_space<vmem>>, vector<16x128xf32>
    %c0_4 = arith.constant 0 : index
    %c0_5 = arith.constant 0 : index
    %7 = vector.load %arg5[%c0_4, %c0_5] : memref<16x128xf32, #tpu.memory_space<vmem>>, vector<16x128xf32>
    %8 = arith.subf %6, %7 : vector<16x128xf32>
    %9 = arith.mulf %8, %8 : vector<16x128xf32>
    %10 = vector.broadcast %3 : f32 to vector<16x128xf32>
    %11 = arith.cmpf oge, %6, %10 : vector<16x128xf32>
    %12 = vector.broadcast %3 : f32 to vector<16x128xf32>
    %13 = arith.cmpf olt, %7, %12 : vector<16x128xf32>
    %14 = arith.andi %11, %13 : vector<16x128xi1>
    %cst = arith.constant 1.000000e+00 : f32
    %15 = vector.broadcast %4 : f32 to vector<16x128xf32>
    %16 = vector.broadcast %cst : f32 to vector<16x128xf32>
    %17 = arith.select %14, %15, %16 : vector<16x128xi1>, vector<16x128xf32>
    %18 = arith.mulf %9, %17 : vector<16x128xf32>
    %c2_i32 = arith.constant 2 : i32
    %19 = arith.muli %arg0, %c2_i32 : i32
    %20 = arith.addi %19, %arg1 : i32
    %c16_i32 = arith.constant 16 : i32
    %21 = arith.muli %20, %c16_i32 : i32
    %c16_i32_6 = arith.constant 16 : i32
    %22 = arith.addi %21, %c16_i32_6 : i32
    %23 = arith.cmpi sle, %22, %5 : i32
    %24 = arith.extui %23 : i1 to i32
    %c0_i32_7 = arith.constant 0 : i32
    %25 = arith.cmpi ne, %24, %c0_i32_7 : i32
    scf.if %25 {
      %29 = vector.shape_cast %18 : vector<16x128xf32> to vector<2x8x128xf32>
      %cst_9 = arith.constant dense<0.000000e+00> : vector<8x128xf32>
      %30 = vector.multi_reduction <add>, %29, %cst_9 [0] : vector<2x8x128xf32> to vector<8x128xf32>
      %c0_10 = arith.constant 0 : index
      %c0_11 = arith.constant 0 : index
      %c0_12 = arith.constant 0 : index
      %31 = vector.load %arg6[%c0_10, %c0_11, %c0_12] : memref<1x8x128xf32, #tpu.memory_space<vmem>>, vector<1x8x128xf32>
      %32 = vector.shape_cast %30 : vector<8x128xf32> to vector<1x8x128xf32>
      %33 = arith.addf %31, %32 : vector<1x8x128xf32>
      %c0_13 = arith.constant 0 : index
      %c0_14 = arith.constant 0 : index
      %c0_15 = arith.constant 0 : index
      %34 = vector.load %arg6[%c0_13, %c0_14, %c0_15] : memref<1x8x128xf32, #tpu.memory_space<vmem>>, vector<1x8x128xf32>
      tpu.vector_store %arg6[%c0_13, %c0_14, %c0_15], %33 {strides = array<i32>} : memref<1x8x128xf32, #tpu.memory_space<vmem>>, vector<1x8x128xf32>,
    } else {
    }
    %true = arith.constant true
    %26 = arith.xori %23, %true : i1
    %27 = arith.extui %26 : i1 to i32
    %c0_i32_8 = arith.constant 0 : i32
    %28 = arith.cmpi ne, %27, %c0_i32_8 : i32
    scf.if %28 {
      %29 = tpu.iota {dimensions = array<i32: 0>} : vector<16x128xi32>
      %30 = vector.broadcast %21 : i32 to vector<16x128xi32>
      %31 = arith.addi %30, %29 : vector<16x128xi32>
      %32 = vector.broadcast %5 : i32 to vector<16x128xi32>
      %33 = arith.cmpi slt, %31, %32 : vector<16x128xi32>
      %cst_9 = arith.constant 0.000000e+00 : f32
      %34 = vector.broadcast %cst_9 : f32 to vector<16x128xf32>
      %35 = arith.select %33, %18, %34 : vector<16x128xi1>, vector<16x128xf32>
      %36 = vector.shape_cast %35 : vector<16x128xf32> to vector<2x8x128xf32>
      %cst_10 = arith.constant dense<0.000000e+00> : vector<8x128xf32>
      %37 = vector.multi_reduction <add>, %36, %cst_10 [0] : vector<2x8x128xf32> to vector<8x128xf32>
      %c0_11 = arith.constant 0 : index
      %c0_12 = arith.constant 0 : index
      %c0_13 = arith.constant 0 : index
      %38 = vector.load %arg6[%c0_11, %c0_12, %c0_13] : memref<1x8x128xf32, #tpu.memory_space<vmem>>, vector<1x8x128xf32>
      %39 = vector.shape_cast %37 : vector<8x128xf32> to vector<1x8x128xf32>
      %40 = arith.addf %38, %39 : vector<1x8x128xf32>
      %c0_14 = arith.constant 0 : index
      %c0_15 = arith.constant 0 : index
      %c0_16 = arith.constant 0 : index
      %41 = vector.load %arg6[%c0_14, %c0_15, %c0_16] : memref<1x8x128xf32, #tpu.memory_space<vmem>>, vector<1x8x128xf32>
      tpu.vector_store %arg6[%c0_14, %c0_15, %c0_16], %40 {strides = array<i32>} : memref<1x8x128xf32, #tpu.memory_space<vmem>>, vector<1x8x128xf32>,
    } else {
    }
    return
  }
  func.func @transform_0(%arg0: i32, %arg1: i32) -> i32 {
    %c0_i32 = arith.constant 0 : i32
    %c0_i32_0 = arith.constant 0 : i32
    return %c0_i32 : i32
  }
  func.func @transform_1(%arg0: i32, %arg1: i32) -> i32 {
    %c0_i32 = arith.constant 0 : i32
    %c0_i32_0 = arith.constant 0 : i32
    return %c0_i32 : i32
  }
  func.func @transform_2(%arg0: i32, %arg1: i32) -> (i32, i32) {
    %c2_i32 = arith.constant 2 : i32
    %0 = arith.muli %arg0, %c2_i32 : i32
    %1 = arith.addi %0, %arg1 : i32
    %c1_i32 = arith.constant 1 : i32
    %2 = arith.minsi %1, %c1_i32 : i32
    %c0_i32 = arith.constant 0 : i32
    %c0_i32_0 = arith.constant 0 : i32
    return %2, %c0_i32 : i32, i32
  }
  func.func @transform_3(%arg0: i32, %arg1: i32) -> (i32, i32) {
    %c2_i32 = arith.constant 2 : i32
    %0 = arith.muli %arg0, %c2_i32 : i32
    %1 = arith.addi %0, %arg1 : i32
    %c1_i32 = arith.constant 1 : i32
    %2 = arith.minsi %1, %c1_i32 : i32
    %c0_i32 = arith.constant 0 : i32
    %c0_i32_0 = arith.constant 0 : i32
    return %2, %c0_i32 : i32, i32
  }
  func.func @transform_4(%arg0: i32, %arg1: i32) -> (i32, i32, i32) {
    %c0_i32 = arith.constant 0 : i32
    %c0_i32_0 = arith.constant 0 : i32
    %c0_i32_1 = arith.constant 0 : i32
    return %arg0, %c0_i32, %c0_i32_0 : i32, i32, i32
  }
}

</mosaic_0001>

<bundles_post_ra>
// kernel: tpu_custom_call.1
= control target key start
LH: loop header
LB: loop body
LE: loop exit
PB: predicated region body
PF: predicated region fallthrough
CT: control target
= control target key end

     0   :  { %s1044_s0 = inlined_call_operand.vmem [shape: f32[2], index: 0, kind: input, shape index: {}]   ;;  %s1045_s1 = inlined_call_operand.<no memory space> [shape: s32[1], index: 1, kind: input, shape index: {}]   ;;  %s1046_s2 = inlined_call_operand.hbm [shape: f32[20,128], index: 2, kind: input, shape index: {}]   ;;  %s1047_s3 = inlined_call_operand.hbm [shape: f32[20,128], index: 3, kind: input, shape index: {}]   ;;  %s1048_s4 = inlined_call_operand.hbm [shape: f32[1,8,128], index: 4, kind: output, shape index: {}]  }
   0x1   :  { %9 = sst [smem:[#allocation2]] %s1045_s1 }
   0x2   :  { %10 = vsyncpa [#allocation6], 0 }
   0x3   :  { %11 = vsyncpa [#allocation4], 0 }
   0x4   :  { %13 = vsyncpa [#allocation4 + $0x1], 0 }
   0x5   :  { %14 = vsyncpa [#allocation9], 0 }
   0x6   :  { %16 = vsyncpa [#allocation9 + $0x1], 0 }
   0x7   :  { %17 = vsyncpa [#allocation5], 0  ;;  %s830_s17 = smov 0   ;;  %s832_s18 = smov 0  }
   0x8   :  { %s834_s19 = smov 0   ;;  %s836_s20 = smov 0  }
   0x9   :  { %s838_s21 = smov 0   ;;  %s840_s22 = smov 0  }
   0xa LB: > { %s1049_s1 = sadd.s32 4294967295, %s791_s22   ;;  %s32_s23 = sadd.s32 1, %s787_s21  ;;  %s791_s22 = sphi %s840_s22, %s23_s22   ;;  %s787_s21 = sphi %s838_s21, %s1061_s21   ;;  %s783_s20 = sphi %s836_s20, %s1060_s20   ;;  %s779_s19 = sphi %s834_s19, %s1059_s19   ;;  %s775_s18 = sphi %s832_s18, %s1058_s18   ;;  %s771_s17 = sphi %s830_s17, %s1057_s17  }
   0xb   : > { %p33_p0 = scmp.ge.s32.totalorder %s32_s23, 2  ;;  %p83_p1 = scmp.lt.s32.totalorder %s787_s21, 1 }
   0xc   : > { %s92_s24 = sadd.s32 1, %s779_s19  ;;  %p99_p2 = scmp.ne.s32.totalorder %s779_s19, %s775_s18 }
   0xd   : > { %s1063_s23 = smov (%p33_p0, %s32_s23), 0  ;;  %p100_p4 = scmp.eq.s32.totalorder %s791_s22, 0 }
   0xe   : > { %s867_s25 = scalar_select %p83_p1, %s787_s21, 1 }
   0xf   : > { %p87_p3 = scmp.lt.s32.totalorder %s1063_s23, 1  ;;  %p105_p5 = scmp.ne.s32.totalorder %s775_s18, %s771_s17 }
  0x10   : > { %p874_p6 = scmp.eq.s32.totalorder %s1049_s1, 0  ;;  %p879_p7 = por %p100_p4, %p99_p2 }
  0x11   : > { %s88_s27 = scalar_select %p87_p3, %s1063_s23, 1 }
  0x12   : > { %p885_p8 = por %p874_p6, %p105_p5  ;;  %p503_p9 = scmp.ge.s32.totalorder %s791_s22, 1 }
  0x13   : > { %s89_s30 = ssub.s32 %s867_s25, %s88_s27  ;;  %p176_p11 = scmp.lt.s32.totalorder %s791_s22, 3 }
  0x14   : > { %p90_p10 = scmp.eq.s32.totalorder %s89_s30, 0  ;;  %s188_s9 = sshll.u32 %s1044_s0, 4  ;;  %s189_s9 = int_to_ptr.vmem [resolvable:$true] %s188_s9 }
  0x15   : > { %p895_p12 = pnand %p503_p9, %p176_p11  ;;  %s793_s10 = smov [#allocation3]  }
  0x16   : > { %s893_s5 = scalar_select %p90_p10, %s779_s19, %s92_s24  }
  0x17   : > { %p545_p13 = pneg %p895_p12  ;;  %p505_p1 = scmp.ge.s32.totalorder %s791_s22, 2 }
  0x19   : > { %p546_p0 = pnand %p545_p13, %p874_p6  ;;  %198 = sbr.rel (%p505_p1) target bundleno = 102 (0x66), region = 24 }
  0x1b   : > { %548 = dma.vmem_to_smem (!%p546_p0), %s189_s9, 16, %s793_s10, [#allocation6]  }
  0x1e   : > { %201 = sbr.rel (!%p879_p7) target bundleno = 66 (0x42), region = 28  ;;  %s202_s11 = sand.u32 (%p879_p7), 1, %s779_s19  }
  0x1f   : > { %s507_s12 = sshll.u32 (%p879_p7), %s867_s25, 1  ;;  %s506_s13 = sshll.u32 (%p879_p7), %s202_s11, 4 }
  0x20   : > { %s212_s14 = ssub.s32 (%p879_p7), 3, %s507_s12  ;;  %s914_s24 = scalar_lea.sflag (%p879_p7), [#allocation4], %s202_s11 }
  0x21   : > { %p213_p2 = scmp.lt.s32.totalorder (%p879_p7), %s212_s14, 2  ;;  %s206_s27 = scalar_lea.vmem (%p879_p7), [#allocation7], %s506_s13 }
  0x23   : > { %s1065_s14 = smov (!%p213_p2, %s212_s14), 2 }
  0x24   : > { %s508_s15 = sshll.u32 %s1065_s14, 3 }
  0x25   : > { %s216_s16 = ssub.s32 16, %s508_s15 }
  0x26   : > { %s217_s17 = sshll.u32 %s216_s16, 4 }
  0x27   : > { %218 = vsyncadd %s914_s24, %s217_s17  ;;  %p917_p3 = scmp.ne.s32.totalorder %s508_s15, 0  ;;  %s533_s7 = sshll.u32 %s867_s25, 4 }
  0x28   : > { %s221_s10 = scalar_lea.hbm %s1046_s2, %s533_s7  ;;  %s925_s12 = sshll.u32 %s206_s27, 4  ;;  %s226_s12 = int_to_ptr.vmem [resolvable:$true] %s925_s12 }
  0x29   : > { %s223_s11 = sshll.u32 %s221_s10, 4  ;;  %s512_s13 = sshll.u32 %s1065_s14, 7  ;;  %s928_s11 = int_to_ptr.hbm [resolvable:$true] %s223_s11 }
  0x2a   : > { %s623_s16 = sshra.s32 %s928_s11, 4  ;;  %s625_s15 = sshrl.u32 %s512_s13, 4  ;;  %s624_s16 = int_to_ptr.hbm [resolvable:$true] %s623_s16 }
  0x2b   : > { %s630_s17 = scalar_lea.hbm %s624_s16, %s625_s15  ;;  %s634_s27 = scalar_lea.hbm %s1046_s2, 24 }
  0x2c   : > { %p631_p4 = scmp.ne.s32.totalorder %s624_s16, %s630_s17  ;;  %p636_p10 = scmp.lt.s32.totalorder %s634_s27, %s630_s17 }
  0x2e   : > { %p632_p5 = pnand %p631_p4, %p917_p3 }
  0x30   : > { %p633_p9 = pneg %p632_p5 }
  0x32   : > { %p638_p11 = pnand %p636_p10, %p633_p9 }
  0x34   : > { %641 = shalt.err (!%p638_p11)
}
  0x35   : > { %s642_s9 = sshra.s32 %s226_s12, 4  ;;  %s794_s16 = smov [#allocation7]   ;;  %s643_s9 = int_to_ptr.vmem [resolvable:$true] %s642_s9 }
  0x36   : > { %s649_s10 = scalar_lea.vmem %s643_s9, %s625_s15  ;;  %s653_s1 = scalar_lea.vmem %s794_s16, 32 }
  0x37   : > { %p650_p13 = scmp.ne.s32.totalorder %s643_s9, %s649_s10  ;;  %p655_p2 = scmp.lt.s32.totalorder %s653_s1, %s649_s10 }
  0x39   : > { %p651_p0 = pnand %p650_p13, %p917_p3 }
  0x3b   : > { %p652_p1 = pneg %p651_p0 }
  0x3d   : > { %p657_p4 = pnand %p655_p2, %p652_p1 }
  0x3f   : > { %660 = shalt.err (!%p657_p4)
}
  0x40   : > { %s795_s8 = smov 128   ;;  %s796_s17 = smov 8  }
  0x41   : > { %231 = dma.hbm_to_vmem [thread:$0]  (%p917_p3), %s928_s11, %s512_s13, %s226_s12, %s914_s24, %s795_s8, %s795_s8, %s796_s17  }
  0x42 PF: > { %234 = sbr.rel (!%p879_p7) target bundleno = 102 (0x66), region = 32  ;;  %s235_s1 = sand.u32 (%p879_p7), 1, %s779_s19  }
  0x43   : > { %s514_s15 = sshll.u32 (%p879_p7), %s867_s25, 1  ;;  %s513_s7 = sshll.u32 (%p879_p7), %s235_s1, 4 }
  0x44   : > { %s245_s27 = ssub.s32 (%p879_p7), 3, %s514_s15  ;;  %s958_s16 = scalar_lea.sflag (%p879_p7), [#allocation9], %s235_s1 }
  0x45   : > { %p246_p5 = scmp.lt.s32.totalorder (%p879_p7), %s245_s27, 2  ;;  %s239_s14 = scalar_lea.vmem (%p879_p7), [#allocation8], %s513_s7 }
  0x47   : > { %s1067_s27 = smov (!%p246_p5, %s245_s27), 2 }
  0x48   : > { %s515_s9 = sshll.u32 %s1067_s27, 3 }
  0x49   : > { %s249_s10 = ssub.s32 16, %s515_s9 }
  0x4a   : > { %s250_s30 = sshll.u32 %s249_s10, 4 }
  0x4b   : > { %251 = vsyncadd %s958_s16, %s250_s30  ;;  %p961_p7 = scmp.ne.s32.totalorder %s515_s9, 0  ;;  %s534_s24 = sshll.u32 %s867_s25, 4 }
  0x4c   : > { %s254_s13 = scalar_lea.hbm %s1047_s3, %s534_s24  ;;  %s969_s8 = sshll.u32 %s239_s14, 4  ;;  %s259_s8 = int_to_ptr.vmem [resolvable:$true] %s969_s8 }
  0x4d   : > { %s256_s17 = sshll.u32 %s254_s13, 4  ;;  %s519_s1 = sshll.u32 %s1067_s27, 7  ;;  %s972_s17 = int_to_ptr.hbm [resolvable:$true] %s256_s17 }
  0x4e   : > { %s662_s15 = sshra.s32 %s972_s17, 4  ;;  %s664_s7 = sshrl.u32 %s519_s1, 4  ;;  %s663_s15 = int_to_ptr.hbm [resolvable:$true] %s662_s15 }
  0x4f   : > { %s669_s9 = scalar_lea.hbm %s663_s15, %s664_s7  ;;  %s673_s30 = scalar_lea.hbm %s1047_s3, 24 }
  0x50   : > { %p670_p3 = scmp.ne.s32.totalorder %s663_s15, %s669_s9  ;;  %p675_p11 = scmp.lt.s32.totalorder %s673_s30, %s669_s9 }
  0x52   : > { %p671_p9 = pnand %p670_p3, %p961_p7 }
  0x54   : > { %p672_p10 = pneg %p671_p9 }
  0x56   : > { %p677_p13 = pnand %p675_p11, %p672_p10 }
  0x58   : > { %680 = shalt.err (!%p677_p13)
}
  0x59   : > { %s681_s14 = sshra.s32 %s259_s8, 4  ;;  %s797_s12 = smov [#allocation8]   ;;  %s682_s14 = int_to_ptr.vmem [resolvable:$true] %s681_s14 }
  0x5a   : > { %s688_s24 = scalar_lea.vmem %s682_s14, %s664_s7  ;;  %s692_s11 = scalar_lea.vmem %s797_s12, 32 }
  0x5b   : > { %p689_p0 = scmp.ne.s32.totalorder %s682_s14, %s688_s24  ;;  %p694_p4 = scmp.lt.s32.totalorder %s692_s11, %s688_s24 }
  0x5d   : > { %p690_p1 = pnand %p689_p0, %p961_p7 }
  0x5f   : > { %p691_p2 = pneg %p690_p1 }
  0x61   : > { %p696_p5 = pnand %p694_p4, %p691_p2 }
  0x63   : > { %699 = shalt.err (!%p696_p5)
}
  0x64   : > { %s798_s13 = smov 128   ;;  %s799_s15 = smov 8  }
  0x65   : > { %264 = dma.hbm_to_vmem [thread:$0]  (%p961_p7), %s972_s17, %s519_s1, %s259_s8, %s958_s16, %s798_s13, %s798_s13, %s799_s15  }
  0x66 PF: > { %270 = sbr.rel (%p895_p12) target bundleno = 173 (0xad), region = 36 }
  0x6b   : > { %754 = dma.done.wait (%p874_p6), [#allocation6], 16  }
  0x6c   : > { %756 = vsyncadd (%p874_p6), [#allocation6], 4294967280  ;;  %s277_s7 = sand.u32 1, %s775_s18  }
  0x6d   : > { %s522_s9 = sshll.u32 %s277_s7, 4  ;;  %s278_s25 = scalar_lea.sflag [#allocation4], %s277_s7 }
  0x6e   : > { %s281_s28 = scalar_lea.vmem [#allocation7], %s522_s9 }
  0x6f   : > { %758 = dma.done.wait (%p885_p8), %s278_s25, 256  }
  0x70   : > { %760 = vsyncadd (%p885_p8), %s278_s25, 4294967040  ;;  %s288_s6 = scalar_lea.sflag [#allocation9], %s277_s7  ;;  %s291_s27 = scalar_lea.vmem [#allocation8], %s522_s9 }
  0x71   : > { %762 = dma.done.wait (%p885_p8), %s288_s6, 256  }
  0x72   : > { %764 = vsyncadd (%p885_p8), %s288_s6, 4294967040 }
  0x73   : > { %297 = sfence }
  0x74   : > { %p524_p6 = scmp.ne.s32.totalorder %s783_s20, 0 }
  0x76   : > { %339 = sbr.rel (%p524_p6) target bundleno = 125 (0x7d), region = 52 }
  0x7b   : > { %v800_v0 = vmov 0.0  }
  0x7c   : > { %340 = vst [vmem:[#allocation10] sm:$0xff] %v800_v0 }
  0x7d PF: > { %s341_s26 = sld [smem:[#allocation3]]  ;;  %v344_v1 = vld [vmem:[%s281_s28] sm:$0xff]  ;;  %v345_v2 = vld [vmem:[%s281_s28 + $0x8] sm:$0xff]  ;;  %s526_s16 = sshll.u32 %s783_s20, 4 }
  0x7e   : > { %v346_v3 = vld [vmem:[%s291_s27] sm:$0xff]  ;;  %s525_s8 = sld [smem:[#allocation3 + $0x1]]  ;;  %v347_v4 = vld [vmem:[%s291_s27 + $0x8] sm:$0xff]  ;;  %s367_s17 = sadd.s32 16, %s526_s16 }
  0x7f   : > { %s1014_s29 = sld [smem:[#allocation2]]  ;;  %v348_v5 = vsub.f32 %v344_v1, %v346_v3  ;;  %v349_v6 = vsub.f32 %v345_v2, %v347_v4 }
  0x81   : > { %v350_v7 = vmul.f32 %v348_v5, %v348_v5  ;;  %v351_v8 = vmul.f32 %v349_v6, %v349_v6 }
  0x83   : > { %v352_v9 = vstv %s341_s26 }
  0x84   : > { %vm353_vm0 = vcmp.ge.f32.partialorder %v344_v1, %v352_v9  ;;  %vm354_vm1 = vcmp.ge.f32.partialorder %v345_v2, %v352_v9  ;;  %vm355_vm2 = vcmp.lt.f32.partialorder %v346_v3, %v352_v9  ;;  %vm356_vm3 = vcmp.lt.f32.partialorder %v347_v4, %v352_v9 }
  0x85   : > { %vm357_vm4 = vmand %vm353_vm0, %vm355_vm2  ;;  %v359_v10 = vstv %s525_s8  ;;  %p527_p8 = scmp.gt.s32.totalorder %s367_s17, %s1014_s29 }
  0x86   : > { %vm358_vm5 = vmand %vm354_vm1, %vm356_vm3  ;;  %v360_v11 = vsel %vm357_vm4, %v359_v10, 1.0 }
  0x87   : > { %v361_v12 = vsel %vm358_vm5, %v359_v10, 1.0  ;;  %v362_v13 = vmul.f32 %v360_v11, %v350_v7  ;;  %371 = sbr.rel (%p527_p8) target bundleno = 145 (0x91), region = 56 }
  0x88   : > { %v363_v14 = vmul.f32 %v361_v12, %v351_v8 }
  0x8c   : > { %v372_v15 = vadd.f32 %v363_v14, %v362_v13  ;;  %v373_v16 = vld [vmem:[#allocation10] sm:$0xff] }
  0x8e   : > { %v374_v17 = vadd.f32 %v373_v16, %v372_v15 }
  0x90   : > { %375 = vst [vmem:[#allocation10] sm:$0xff] %v374_v17 }
  0x91 PF: > { %p528_p12 = scmp.le.s32.totalorder %s367_s17, %s1014_s29 }
  0x93   : > { %379 = sbr.rel (%p528_p12) target bundleno = 167 (0xa7), region = 60 }
  0x98   : > { %v380_v18 = vlaneseq  ;;  %v383_v19 = vstv %s526_s16  ;;  %v386_v21 = vstv %s1014_s29  ;;  %v392_v27 = vld [vmem:[#allocation10] sm:$0xff] }
  0x9a   : > { %v381_v20 = vshrl.u32 %v380_v18, 7 }
  0x9c   : > { %v382_v22 = vadd.s32 8, %v381_v20  ;;  %v384_v23 = vadd.s32 %v383_v19, %v381_v20 }
  0x9e   : > { %v385_v24 = vadd.s32 %v383_v19, %v382_v22  ;;  %vm387_vm6 = vcmp.lt.s32.totalorder %v384_v23, %v386_v21 }
  0x9f   : > { %v389_v25 = vsel %vm387_vm6, %v362_v13, 0.0 }
  0xa0   : > { %vm388_vm7 = vcmp.lt.s32.totalorder %v385_v24, %v386_v21 }
  0xa1   : > { %v390_v26 = vsel %vm388_vm7, %v363_v14, 0.0 }
  0xa2   : > { %v391_v28 = vadd.f32 %v390_v26, %v389_v25 }
  0xa4   : > { %v393_v29 = vadd.f32 %v392_v27, %v391_v28 }
  0xa6   : > { %394 = vst [vmem:[#allocation10] sm:$0xff] %v393_v29 }
  0xa7 PF: > { %s1056_s1 = sadd.s32 4294967295, %s791_s22   ;;  %s405_s30 = sshll.u32 %s1048_s4, 4  ;;  %s406_s30 = int_to_ptr.hbm [resolvable:$true] %s405_s30 }
  0xa8   : > { %p551_p7 = scmp.eq.s32.totalorder %s1056_s1, 1  ;;  %s801_s14 = smov [#allocation10]  }
  0xa9   : > { %s403_s24 = sshll.u32 %s801_s14, 4  ;;  %s404_s24 = int_to_ptr.vmem [resolvable:$true] %s403_s24 }
  0xaa   : > { %542 = dma.vmem_to_hbm [thread:$0]  (%p551_p7), %s404_s24, 128, %s406_s30, [#allocation5]  }
  0xab   : > { %766 = dma.done.wait (%p551_p7), [#allocation5], 128  }
  0xac   : > { %768 = vsyncadd (%p551_p7), [#allocation5], 4294967168 }
  0xad PF: > { %s23_s22 = sadd.s32 1, %s791_s22   ;;  %s1057_s17 = smov %s775_s18 }
  0xae   : > { %p20_p3 = scmp.ge.s32.totalorder %s23_s22, 4   ;;  %s1058_s18 = smov %s779_s19 }
  0xaf   : > { %s1059_s19 = smov %s893_s5  ;;  %s1060_s20 = smov %s787_s21 }
  0xb0   : > { %s1061_s21 = smov %s1063_s23  ;;  %22 = sbr.rel (!%p20_p3) target bundleno = 10 (0xa), region = 104 }
  0xb5   :  { %419 = vsyncpa [#allocation4], 1 }
  0xb6   :  { %421 = vsyncpa [#allocation4 + $0x1], 1 }
  0xb7   :  { %422 = vsyncpa [#allocation9], 1 }
  0xb8   :  { %424 = vsyncpa [#allocation9 + $0x1], 1 }
  0xb9   :  { %425 = vsyncpa [#allocation5], 1 }
  0xba   :  { %427 = vsyncpa [#allocation5 + $0x1], 1 }
  0xbb   :  { %428 = vsyncpa [#allocation6], 1 }
  0xbc   :  { %430 = vsyncpa [#allocation6 + $0x1], 1 }

</bundles_post_ra>
